<compile_context>
chip_gen: v7x
topology: tpu7x:2x2x1
jax: 0.10.0
libtpu: 0.0.40
codegen_flags: <defaults>
</compile_context>

<pallas_src>
import functools

import jax
import jax.numpy as jnp
from jax.experimental import pallas as pl
from jax.experimental.pallas import tpu as pltpu


K_PAD = 896   # 7 * 128 (padded 784)
H1 = 128
H2 = 64
N_PAD = 128   # lane-dense padded 10


def _round_up(n, m):
    return (n + m - 1) // m * m


def _student_kernel(x_ref, w1_ref, b1_ref, w2_ref, b2_ref, w3_ref, b3_ref, o_ref):
    # x_ref: (TB, 896) bf16; weights bf16; biases f32; o_ref: (TB, 128) f32.
    x = x_ref[...]

    # fc1 + ReLU (MXU bf16 -> f32 accumulate)
    h1 = jnp.dot(x, w1_ref[...], preferred_element_type=jnp.float32) + b1_ref[...]
    h1 = jnp.maximum(h1, 0.0)

    # fc2 + ReLU
    h2 = jnp.dot(h1.astype(jnp.bfloat16), w2_ref[...],
                 preferred_element_type=jnp.float32) + b2_ref[...]
    h2 = jnp.maximum(h2, 0.0)

    # fc3 + ReLU (padded to 128 output lanes; pad columns stay exactly 0)
    h3 = jnp.dot(h2.astype(jnp.bfloat16), w3_ref[...],
                 preferred_element_type=jnp.float32) + b3_ref[...]
    h3 = jnp.maximum(h3, 0.0)

    o_ref[...] = h3


@functools.partial(jax.jit, static_argnames=())
def student_forward(x_nchw, params):
    """x_nchw: (B, 1, 28, 28) float32. Returns (B, 10) float32."""
    w1, b1, w2, b2, w3, b3 = params
    B = x_nchw.shape[0]
    x_flat = x_nchw.reshape(B, 28 * 28)  # same semantics as torch.flatten(x, 1)

    # Batch tile: 512 rows per grid step (good MXU M-dim, modest VMEM even on
    # v7x's 64 MiB), clamped down for tiny batches.
    TB = min(512, _round_up(B, 8))
    padB = _round_up(B, TB)

    # --- pad / cast operands (exact: zero pad on reduced/extra dims) ---
    x_p = jnp.zeros((padB, K_PAD), jnp.bfloat16)
    x_p = x_p.at[:B, :784].set(x_flat.astype(jnp.bfloat16))

    w1_p = jnp.zeros((K_PAD, H1), jnp.bfloat16).at[:784, :].set(w1.astype(jnp.bfloat16))
    w2_p = w2.astype(jnp.bfloat16)
    w3_p = jnp.zeros((H2, N_PAD), jnp.bfloat16).at[:, :10].set(w3.astype(jnp.bfloat16))

    b1_f = b1.astype(jnp.float32)
    b2_f = b2.astype(jnp.float32)
    b3_p = jnp.zeros((1, N_PAD), jnp.float32).at[:, :10].set(b3.astype(jnp.float32))

    def full(shape):
        # Weights / biases: same block every grid step -> stay VMEM-resident.
        return pl.BlockSpec(shape, lambda i: (0, 0))

    out = pl.pallas_call(
        _student_kernel,
        out_shape=jax.ShapeDtypeStruct((padB, N_PAD), jnp.float32),
        grid=(padB // TB,),
        in_specs=[
            pl.BlockSpec((TB, K_PAD), lambda i: (i, 0)),  # x: tiled over batch
            full((K_PAD, H1)),
            full((1, H1)),
            full((H1, H2)),
            full((1, H2)),
            full((H2, N_PAD)),
            full((1, N_PAD)),
        ],
        out_specs=pl.BlockSpec((TB, N_PAD), lambda i: (i, 0)),
        compiler_params=pltpu.CompilerParams(
            dimension_semantics=("parallel",)),
    )(x_p, w1_p, b1_f, w2_p, b2_f, w3_p, b3_p)

    return out[:B, :10]


def init_params(key):
    """Deterministic init matching nn.Linear shapes (weights stored transposed)."""
    dims = [(28 * 28, 128), (128, 64), (64, 10)]
    params = []
    for i, (fan_in, fan_out) in enumerate(dims):
        kw, kb = jax.random.split(jax.random.fold_in(key, i))
        bound = 1.0 / (fan_in ** 0.5)  # PyTorch nn.Linear default bound
        w = jax.random.uniform(kw, (fan_in, fan_out), jnp.float32, -bound, bound)
        b = jax.random.uniform(kb, (1, fan_out), jnp.float32, -bound, bound)
        params += [w, b]
    return tuple(params)


if __name__ == "__main__":
    key = jax.random.PRNGKey(0)
    k_x, k_p = jax.random.split(key)

    B = 8
    x = jax.random.normal(k_x, (B, 1, 28, 28), jnp.float32)
    params = init_params(k_p)

    out = student_forward(x, params)
    jax.block_until_ready(out)
    assert out.shape == (B, 10)

    # Reference with the same bf16 input/weight quantization (f32 accumulation).
    w1, b1, w2, b2, w3, b3 = params
    xf = x.reshape(B, 28 * 28).astype(jnp.bfloat16)
    h1 = jnp.maximum(
        jnp.dot(xf, w1.astype(jnp.bfloat16), preferred_element_type=jnp.float32) + b1, 0.0)
    h2 = jnp.maximum(
        jnp.dot(h1.astype(jnp.bfloat16), w2.astype(jnp.bfloat16),
                preferred_element_type=jnp.float32) + b2, 0.0)
    ref = jnp.maximum(
        jnp.dot(h2.astype(jnp.bfloat16), w3.astype(jnp.bfloat16),
                preferred_element_type=jnp.float32) + b3, 0.0)

    assert jnp.allclose(out, ref, atol=2e-2, rtol=2e-2), (
        float(jnp.max(jnp.abs(out - ref))))

    print("KERNEL_OK")
</pallas_src>

<mosaic_0001>
module attributes {stable_mosaic.version = 11 : i64} {
  func.func @_student_kernel(%arg0: i32, %arg1: memref<8x896xbf16, #tpu.memory_space<vmem>>, %arg2: memref<896x128xbf16, #tpu.memory_space<vmem>>, %arg3: memref<1x128xf32, #tpu.memory_space<vmem>>, %arg4: memref<128x64xbf16, #tpu.memory_space<vmem>>, %arg5: memref<1x64xf32, #tpu.memory_space<vmem>>, %arg6: memref<64x128xbf16, #tpu.memory_space<vmem>>, %arg7: memref<1x128xf32, #tpu.memory_space<vmem>>, %arg8: memref<8x128xf32, #tpu.memory_space<vmem>>) attributes {dimension_semantics = [#tpu.dimension_semantics<parallel>], iteration_bounds = array<i64: 1>, scalar_prefetch = 0 : i64, scratch_operands = 0 : i64, tpu.core_type = #tpu.core_type<tc>, window_params = [{transform_indices = @transform_0, window_bounds = array<i64: 8, 896>}, {pipeline_mode = #tpu.pipeline_mode<synchronous>, transform_indices = @transform_1, window_bounds = array<i64: 896, 128>}, {pipeline_mode = #tpu.pipeline_mode<synchronous>, transform_indices = @transform_2, window_bounds = array<i64: 1, 128>}, {pipeline_mode = #tpu.pipeline_mode<synchronous>, transform_indices = @transform_3, window_bounds = array<i64: 128, 64>}, {pipeline_mode = #tpu.pipeline_mode<synchronous>, transform_indices = @transform_4, window_bounds = array<i64: 1, 64>}, {pipeline_mode = #tpu.pipeline_mode<synchronous>, transform_indices = @transform_5, window_bounds = array<i64: 64, 128>}, {pipeline_mode = #tpu.pipeline_mode<synchronous>, transform_indices = @transform_6, window_bounds = array<i64: 1, 128>}, {transform_indices = @transform_7, window_bounds = array<i64: 8, 128>}]} {
    %c0 = arith.constant 0 : index
    %c0_0 = arith.constant 0 : index
    %0 = vector.load %arg1[%c0, %c0_0] : memref<8x896xbf16, #tpu.memory_space<vmem>>, vector<8x896xbf16>
    %c0_1 = arith.constant 0 : index
    %c0_2 = arith.constant 0 : index
    %1 = vector.load %arg2[%c0_1, %c0_2] : memref<896x128xbf16, #tpu.memory_space<vmem>>, vector<896x128xbf16>
    %cst = arith.constant dense<0.000000e+00> : vector<8x128xf32>
    %2 = tpu.matmul %0, %1, %cst {dimension_numbers = #tpu.dot_dimension_numbers<[1], [0], [0], [1], [0, 0, 1, 1], [], []>} : vector<8x896xbf16>, vector<896x128xbf16>, vector<8x128xf32> -> vector<8x128xf32>
    %c0_3 = arith.constant 0 : index
    %c0_4 = arith.constant 0 : index
    %3 = vector.load %arg3[%c0_3, %c0_4] : memref<1x128xf32, #tpu.memory_space<vmem>>, vector<1x128xf32>
    %4 = vector.broadcast %3 : vector<1x128xf32> to vector<8x128xf32>
    %5 = arith.addf %2, %4 : vector<8x128xf32>
    %cst_5 = arith.constant 0.000000e+00 : f32
    %6 = vector.broadcast %cst_5 : f32 to vector<8x128xf32>
    %7 = arith.maximumf %5, %6 : vector<8x128xf32>
    %8 = arith.truncf %7 : vector<8x128xf32> to vector<8x128xbf16>
    %c0_6 = arith.constant 0 : index
    %c0_7 = arith.constant 0 : index
    %9 = vector.load %arg4[%c0_6, %c0_7] : memref<128x64xbf16, #tpu.memory_space<vmem>>, vector<128x64xbf16>
    %cst_8 = arith.constant dense<0.000000e+00> : vector<8x64xf32>
    %10 = tpu.matmul %8, %9, %cst_8 {dimension_numbers = #tpu.dot_dimension_numbers<[1], [0], [0], [1], [0, 0, 1, 1], [], []>} : vector<8x128xbf16>, vector<128x64xbf16>, vector<8x64xf32> -> vector<8x64xf32>
    %c0_9 = arith.constant 0 : index
    %c0_10 = arith.constant 0 : index
    %11 = vector.load %arg5[%c0_9, %c0_10] : memref<1x64xf32, #tpu.memory_space<vmem>>, vector<1x64xf32>
    %12 = vector.broadcast %11 : vector<1x64xf32> to vector<8x64xf32>
    %13 = arith.addf %10, %12 : vector<8x64xf32>
    %cst_11 = arith.constant 0.000000e+00 : f32
    %14 = vector.broadcast %cst_11 : f32 to vector<8x64xf32>
    %15 = arith.maximumf %13, %14 : vector<8x64xf32>
    %16 = arith.truncf %15 : vector<8x64xf32> to vector<8x64xbf16>
    %c0_12 = arith.constant 0 : index
    %c0_13 = arith.constant 0 : index
    %17 = vector.load %arg6[%c0_12, %c0_13] : memref<64x128xbf16, #tpu.memory_space<vmem>>, vector<64x128xbf16>
    %cst_14 = arith.constant dense<0.000000e+00> : vector<8x128xf32>
    %18 = tpu.matmul %16, %17, %cst_14 {dimension_numbers = #tpu.dot_dimension_numbers<[1], [0], [0], [1], [0, 0, 1, 1], [], []>} : vector<8x64xbf16>, vector<64x128xbf16>, vector<8x128xf32> -> vector<8x128xf32>
    %c0_15 = arith.constant 0 : index
    %c0_16 = arith.constant 0 : index
    %19 = vector.load %arg7[%c0_15, %c0_16] : memref<1x128xf32, #tpu.memory_space<vmem>>, vector<1x128xf32>
    %20 = vector.broadcast %19 : vector<1x128xf32> to vector<8x128xf32>
    %21 = arith.addf %18, %20 : vector<8x128xf32>
    %cst_17 = arith.constant 0.000000e+00 : f32
    %22 = vector.broadcast %cst_17 : f32 to vector<8x128xf32>
    %23 = arith.maximumf %21, %22 : vector<8x128xf32>
    %c0_18 = arith.constant 0 : index
    %c0_19 = arith.constant 0 : index
    %24 = vector.load %arg8[%c0_18, %c0_19] : memref<8x128xf32, #tpu.memory_space<vmem>>, vector<8x128xf32>
    tpu.vector_store %arg8[%c0_18, %c0_19], %23 {strides = array<i32>} : memref<8x128xf32, #tpu.memory_space<vmem>>, vector<8x128xf32>,
    return
  }
  func.func @transform_0(%arg0: i32) -> (i32, i32) {
    %c0_i32 = arith.constant 0 : i32
    %c0_i32_0 = arith.constant 0 : i32
    return %arg0, %c0_i32 : i32, i32
  }
  func.func @transform_1(%arg0: i32) -> (i32, i32) {
    %c0_i32 = arith.constant 0 : i32
    %c0_i32_0 = arith.constant 0 : i32
    %c0_i32_1 = arith.constant 0 : i32
    return %c0_i32, %c0_i32_0 : i32, i32
  }
  func.func @transform_2(%arg0: i32) -> (i32, i32) {
    %c0_i32 = arith.constant 0 : i32
    %c0_i32_0 = arith.constant 0 : i32
    %c0_i32_1 = arith.constant 0 : i32
    return %c0_i32, %c0_i32_0 : i32, i32
  }
  func.func @transform_3(%arg0: i32) -> (i32, i32) {
    %c0_i32 = arith.constant 0 : i32
    %c0_i32_0 = arith.constant 0 : i32
    %c0_i32_1 = arith.constant 0 : i32
    return %c0_i32, %c0_i32_0 : i32, i32
  }
  func.func @transform_4(%arg0: i32) -> (i32, i32) {
    %c0_i32 = arith.constant 0 : i32
    %c0_i32_0 = arith.constant 0 : i32
    %c0_i32_1 = arith.constant 0 : i32
    return %c0_i32, %c0_i32_0 : i32, i32
  }
  func.func @transform_5(%arg0: i32) -> (i32, i32) {
    %c0_i32 = arith.constant 0 : i32
    %c0_i32_0 = arith.constant 0 : i32
    %c0_i32_1 = arith.constant 0 : i32
    return %c0_i32, %c0_i32_0 : i32, i32
  }
  func.func @transform_6(%arg0: i32) -> (i32, i32) {
    %c0_i32 = arith.constant 0 : i32
    %c0_i32_0 = arith.constant 0 : i32
    %c0_i32_1 = arith.constant 0 : i32
    return %c0_i32, %c0_i32_0 : i32, i32
  }
  func.func @transform_7(%arg0: i32) -> (i32, i32) {
    %c0_i32 = arith.constant 0 : i32
    %c0_i32_0 = arith.constant 0 : i32
    return %arg0, %c0_i32 : i32, i32
  }
}

</mosaic_0001>

<bundles_post_ra>
// kernel: student_forward.1
= control target key start
LH: loop header
LB: loop body
LE: loop exit
PB: predicated region body
PF: predicated region fallthrough
CT: control target
= control target key end

     0   :  { %v1208_v42 = vmov 0.0   ;;  %vm1209_vm0 = vmmov 0   ;;  %s1514_s0 = inlined_call_operand.vmem [shape: bf16[8,896], index: 0, kind: input, shape index: {}]   ;;  %s1515_s1 = inlined_call_operand.vmem [shape: bf16[896,128], index: 1, kind: input, shape index: {}]   ;;  %s1516_s2 = inlined_call_operand.vmem [shape: f32[1,128], index: 2, kind: input, shape index: {}]   ;;  %s1517_s3 = inlined_call_operand.vmem [shape: bf16[128,64], index: 3, kind: input, shape index: {}]   ;;  %s1518_s4 = inlined_call_operand.vmem [shape: f32[1,64], index: 4, kind: input, shape index: {}]   ;;  %s1519_s5 = inlined_call_operand.vmem [shape: bf16[64,128], index: 5, kind: input, shape index: {}]   ;;  %s1520_s6 = inlined_call_operand.vmem [shape: f32[1,128], index: 6, kind: input, shape index: {}]   ;;  %s1521_s7 = inlined_call_operand.hbm [shape: f32[8,128], index: 7, kind: output, shape index: {}]  }
   0x1   :  { %v1109_v0 = vld [vmem:[%s1515_s1 + $0x40] sm:$0xff]   ;;  %v1113_v4 = vld [vmem:[%s1515_s1 + $0x48] sm:$0xff]   ;;  %v1117_v8 = vld [vmem:[%s1515_s1 + $0x50] sm:$0xff]  }
   0x2   :  { %v1110_v1 = vld [vmem:[%s1515_s1] sm:$0xff]   ;;  %965 = vmatprep.subr.bf16.mxu0 %v1109_v0  ;;  %v1114_v5 = vld [vmem:[%s1515_s1 + $0x8] sm:$0xff]   ;;  %v1118_v9 = vld [vmem:[%s1515_s1 + $0x10] sm:$0xff]  }
   0x3   :  { %v1111_v2 = vld [vmem:[%s1515_s1 + $0xc0] sm:$0xff]   ;;  %966 = vmatpush3.bf16.msra.mxu0 %v1110_v1  ;;  %v1115_v6 = vld [vmem:[%s1515_s1 + $0xc8] sm:$0xff]   ;;  %v1119_v10 = vld [vmem:[%s1515_s1 + $0xd0] sm:$0xff]  }
   0x4   :  { %v1112_v3 = vld [vmem:[%s1515_s1 + $0x80] sm:$0xff]   ;;  %987 = vmatprep.subr.bf16.mxu1 %v1111_v2  ;;  %967 = vmatprep.subr.bf16.mxu0 %v1113_v4  ;;  %v1116_v7 = vld [vmem:[%s1515_s1 + $0x88] sm:$0xff]   ;;  %v1120_v11 = vld [vmem:[%s1515_s1 + $0x90] sm:$0xff]  }
   0x5   :  { %988 = vmatpush3.bf16.msra.mxu1 %v1112_v3  ;;  %v1121_v12 = vld [vmem:[%s1515_s1 + $0x58] sm:$0xff]   ;;  %v1125_v16 = vld [vmem:[%s1515_s1 + $0x60] sm:$0xff]   ;;  %v1129_v20 = vld [vmem:[%s1515_s1 + $0x68] sm:$0xff]  }
   0x6   :  { %989 = vmatprep.subr.bf16.mxu1 %v1115_v6  ;;  %v1122_v13 = vld [vmem:[%s1515_s1 + $0x18] sm:$0xff]   ;;  %v1126_v17 = vld [vmem:[%s1515_s1 + $0x20] sm:$0xff]   ;;  %v1130_v21 = vld [vmem:[%s1515_s1 + $0x28] sm:$0xff]  }
   0x7   :  { %968 = vmatpush3.bf16.msra.mxu0 %v1114_v5  ;;  %v1123_v14 = vld [vmem:[%s1515_s1 + $0xd8] sm:$0xff]   ;;  %v1127_v18 = vld [vmem:[%s1515_s1 + $0xe0] sm:$0xff]   ;;  %v1131_v22 = vld [vmem:[%s1515_s1 + $0xe8] sm:$0xff]  }
   0x8   :  { %969 = vmatprep.subr.bf16.mxu0 %v1117_v8  ;;  %v1124_v15 = vld [vmem:[%s1515_s1 + $0x98] sm:$0xff]   ;;  %v1128_v19 = vld [vmem:[%s1515_s1 + $0xa0] sm:$0xff]   ;;  %v1132_v23 = vld [vmem:[%s1515_s1 + $0xa8] sm:$0xff]  }
   0x9   :  { %990 = vmatpush3.bf16.msra.mxu1 %v1116_v7  ;;  %v1133_v24 = vld [vmem:[%s1515_s1 + $0x70] sm:$0xff]   ;;  %v1137_v28 = vld [vmem:[%s1515_s1 + $0x78] sm:$0xff]   ;;  %v28_v31 = vld [vmem:[%s1514_s0] sm:$0xff] }
   0xa   :  { %991 = vmatprep.subr.bf16.mxu1 %v1119_v10  ;;  %v1134_v25 = vld [vmem:[%s1515_s1 + $0x30] sm:$0xff]   ;;  %v1138_v29 = vld [vmem:[%s1515_s1 + $0x38] sm:$0xff]   ;;  %v887_v32 = vcombine.low %v28_v31, %v28_v31  ;;  %v888_v33 = vcombine.high %v28_v31, %v28_v31  ;;  %v1143_v35 = vld [vmem:[%s1515_s1 + $0x140] sm:$0xff]  }
   0xb   :  { %970 = vmatpush3.bf16.msra.mxu0 %v1118_v9  ;;  %v1135_v26 = vld [vmem:[%s1515_s1 + $0xf0] sm:$0xff]   ;;  %v1139_v30 = vld [vmem:[%s1515_s1 + $0xf8] sm:$0xff]   ;;  %v29_v36 = vld [vmem:[%s1514_s0 + $0x8] sm:$0xff] }
   0xc   :  { %971 = vmatprep.subr.bf16.mxu0 %v1121_v12  ;;  %v1136_v27 = vld [vmem:[%s1515_s1 + $0xb0] sm:$0xff]   ;;  %v1142_v34 = vld [vmem:[%s1515_s1 + $0xb8] sm:$0xff]   ;;  %544 = vmatprep.mubr.bf16.mxu0 %v888_v33  ;;  %v889_v37 = vcombine.low %v29_v36, %v29_v36  ;;  %v890_v38 = vcombine.high %v29_v36, %v29_v36  ;;  %v1146_v39 = vld [vmem:[%s1515_s1 + $0x100] sm:$0xff]  }
   0xd   :  { %992 = vmatpush3.bf16.msra.mxu1 %v1120_v11  ;;  %v1147_v40 = vld [vmem:[%s1515_s1 + $0x180] sm:$0xff]   ;;  %v1148_v41 = vld [vmem:[%s1515_s1 + $0x148] sm:$0xff]   ;;  %v1151_v45 = vld [vmem:[%s1515_s1 + $0x150] sm:$0xff]  }
   0xe   :  { %993 = vmatprep.subr.bf16.mxu1 %v1123_v14  ;;  %584 = vmatprep.mubr.bf16.mxu1 %v890_v38  ;;  %v1149_v43 = vld [vmem:[%s1515_s1 + $0x108] sm:$0xff]   ;;  %v1152_v46 = vld [vmem:[%s1515_s1 + $0x110] sm:$0xff]   ;;  %v1154_v48 = vld [vmem:[%s1515_s1 + $0x158] sm:$0xff]  }
   0xf   :  { %972 = vmatpush3.bf16.msra.mxu0 %v1122_v13  ;;  %v1150_v44 = vld [vmem:[%s1515_s1 + $0x188] sm:$0xff]   ;;  %v1153_v47 = vld [vmem:[%s1515_s1 + $0x190] sm:$0xff]   ;;  %v1155_v49 = vld [vmem:[%s1515_s1 + $0x118] sm:$0xff]  }
  0x10   :  { %973 = vmatprep.subr.bf16.mxu0 %v1125_v16  ;;  %v1157_v50 = vld [vmem:[%s1515_s1 + $0x160] sm:$0xff]   ;;  %v1156_v51 = vld [vmem:[%s1515_s1 + $0x198] sm:$0xff]   ;;  %v1160_v53 = vld [vmem:[%s1515_s1 + $0x168] sm:$0xff]  }
  0x11   :  { %994 = vmatpush3.bf16.msra.mxu1 %v1124_v15  ;;  %v1158_v52 = vld [vmem:[%s1515_s1 + $0x120] sm:$0xff]   ;;  %v1161_v55 = vld [vmem:[%s1515_s1 + $0x128] sm:$0xff]   ;;  %v1163_v56 = vld [vmem:[%s1515_s1 + $0x170] sm:$0xff]  }
  0x12   :  { %995 = vmatprep.subr.bf16.mxu1 %v1127_v18  ;;  %v1159_v54 = vld [vmem:[%s1515_s1 + $0x1a0] sm:$0xff]   ;;  %v1162_v57 = vld [vmem:[%s1515_s1 + $0x1a8] sm:$0xff]   ;;  %v1164_v58 = vld [vmem:[%s1515_s1 + $0x130] sm:$0xff]  }
  0x13   :  { %974 = vmatpush3.bf16.msra.mxu0 %v1126_v17  ;;  %v30_v59 = vld [vmem:[%s1514_s0 + $0x10] sm:$0xff]  ;;  %v1166_v62 = vld [vmem:[%s1515_s1 + $0x178] sm:$0xff]  }
  0x14   :  { %975 = vmatprep.subr.bf16.mxu0 %v1129_v20  ;;  %v1165_v60 = vld [vmem:[%s1515_s1 + $0x1b0] sm:$0xff]   ;;  %v892_v61 = vcombine.high %v30_v59, %v30_v59  ;;  %v1167_v63 = vld [vmem:[%s1515_s1 + $0x138] sm:$0xff]   ;;  %v891_v1 = vcombine.low %v30_v59, %v30_v59 }
  0x15   :  { %996 = vmatpush3.bf16.msra.mxu1 %v1128_v19  ;;  %v1170_v0 = vld [vmem:[%s1515_s1 + $0x1b8] sm:$0xff]  }
  0x16   :  { %997 = vmatprep.subr.bf16.mxu1 %v1131_v22  ;;  %v1171_v2 = vld [vmem:[%s1514_s0 + $0x18] ss:$0 sps:$4 sm:$0xff]  }
  0x17   :  { %976 = vmatpush3.bf16.msra.mxu0 %v1130_v21 }
  0x18   :  { %977 = vmatprep.subr.bf16.mxu0 %v1133_v24 }
  0x19   :  { %998 = vmatpush3.bf16.msra.mxu1 %v1132_v23 }
  0x1a   :  { %999 = vmatprep.subr.bf16.mxu1 %v1135_v26 }
  0x1b   :  { %978 = vmatpush3.bf16.msra.mxu0 %v1134_v25 }
  0x1c   :  { %979 = vmatprep.subr.bf16.mxu0 %v1137_v28 }
  0x1d   :  { %1000 = vmatpush3.bf16.msra.mxu1 %v1136_v27 }
  0x1e   :  { %1001 = vmatprep.subr.bf16.mxu1 %v1139_v30 }
  0x1f   :  { %980 = vmatpush3.bf16.msra.mxu0 %v1138_v29 }
  0x20   :  { %1009 = vmatprep.subr.bf16.mxu0 %v1143_v35 }
  0x21   :  { %1002 = vmatpush3.bf16.msra.mxu1 %v1142_v34 }
  0x22   :  { %545 = vmatmul.mubr.bf16.vlgmr.msra.gmra.mrb[0].mxu0 %v887_v32  ;;  %1054 = vmatprep.subr.bf16.mxu1 %v1208_v42 }
  0x23   :  { %1010 = vmatpush3.bf16.msra.mxu0 %v1146_v39  ;;  %624 = vmatprep.mubr.bf16.mxu0 %v892_v61 }
  0x24   :  { %585 = vmatmul.mubr.bf16.vlgmr.msra.gmra.mrb[0].mxu1 %v889_v37  ;;  %1011 = vmatprep.subr.bf16.mxu0 %v1148_v41 }
  0x25   :  { %1055 = vmatpush3.bf16.msra.mxu1 %v1147_v40  ;;  %1070 = vmatprep.mubr.msk.bf16.mxu1 %vm1209_vm0, %v1208_v42 }
  0x26   :  { %1056 = vmatprep.subr.bf16.mxu1 %v1208_v42 }
  0x27   :  { %1012 = vmatpush3.bf16.msra.mxu0 %v1149_v43 }
  0x28   :  { %1013 = vmatprep.subr.bf16.mxu0 %v1151_v45 }
  0x29   :  { %1057 = vmatpush3.bf16.msra.mxu1 %v1150_v44 }
  0x2a   :  { %1058 = vmatprep.subr.bf16.mxu1 %v1208_v42 }
  0x2b   :  { %1014 = vmatpush3.bf16.msra.mxu0 %v1152_v46 }
  0x2c   :  { %1015 = vmatprep.subr.bf16.mxu0 %v1154_v48 }
  0x2d   :  { %1059 = vmatpush3.bf16.msra.mxu1 %v1153_v47 }
  0x2e   :  { %1060 = vmatprep.subr.bf16.mxu1 %v1208_v42 }
  0x2f   :  { %1016 = vmatpush3.bf16.msra.mxu0 %v1155_v49 }
  0x30   :  { %1017 = vmatprep.subr.bf16.mxu0 %v1157_v50 }
  0x31   :  { %1061 = vmatpush3.bf16.msra.mxu1 %v1156_v51 }
  0x32   :  { %1062 = vmatprep.subr.bf16.mxu1 %v1208_v42 }
  0x33   :  { %1018 = vmatpush3.bf16.msra.mxu0 %v1158_v52 }
  0x34   :  { %1019 = vmatprep.subr.bf16.mxu0 %v1160_v53 }
  0x35   :  { %1063 = vmatpush3.bf16.msra.mxu1 %v1159_v54 }
  0x36   :  { %1064 = vmatprep.subr.bf16.mxu1 %v1208_v42 }
  0x37   :  { %1020 = vmatpush3.bf16.msra.mxu0 %v1161_v55 }
  0x38   :  { %1021 = vmatprep.subr.bf16.mxu0 %v1163_v56 }
  0x39   :  { %1065 = vmatpush3.bf16.msra.mxu1 %v1162_v57 }
  0x3a   :  { %1066 = vmatprep.subr.bf16.mxu1 %v1208_v42 }
  0x3b   :  { %1022 = vmatpush3.bf16.msra.mxu0 %v1164_v58 }
  0x3c   :  { %1023 = vmatprep.subr.bf16.mxu0 %v1166_v62 }
  0x3d   :  { %1067 = vmatpush3.bf16.msra.mxu1 %v1165_v60 }
  0x3e   :  { %1068 = vmatprep.subr.bf16.mxu1 %v1208_v42 }
  0x3f   :  { %1024 = vmatpush3.bf16.msra.mxu0 %v1167_v63 }
  0x40   :  { %1074 = vmatprep.subr.bf16.mxu0 %v1208_v42 }
  0x41   :  { %12 = vsyncpa [#allocation3], 0  ;;  %1069 = vmatpush3.bf16.msra.mxu1 %v1170_v0  ;;  %v1172_v3 = vld [vmem:[%s1517_s3] sm:$0xff]   ;;  %v1173_v4 = vld [vmem:[%s1517_s3 + $0x8] sm:$0xff]   ;;  %vm826_vm1 = vcmask 523264  }
  0x42   :  { %625 = vmatmul.mubr.bf16.vlgmr.msra.gmra.mrb[4].mxu0 %v891_v1  ;;  %1094 = vmatprep.subr.bf16.mxu1 %v1208_v42  ;;  %v1174_v5 = vld [vmem:[%s1517_s3 + $0x10] sm:$0xff]   ;;  %v1175_v6 = vld [vmem:[%s1517_s3 + $0x18] sm:$0xff]   ;;  %v1176_v7 = vld [vmem:[%s1517_s3 + $0x20] sm:$0xff]  }
  0x43   :  { %1090 = vmatprep.mubr.msk.bf16.mxu0 %vm1209_vm0, %v1208_v42  ;;  %1075 = vmatpush3.bf16.msra.mxu0 %v1172_v3  ;;  %v1177_v8 = vld [vmem:[%s1517_s3 + $0x28] sm:$0xff]   ;;  %v1178_v9 = vld [vmem:[%s1517_s3 + $0x30] sm:$0xff]   ;;  %v1179_v10 = vld [vmem:[%s1517_s3 + $0x38] sm:$0xff]  }
  0x44   :  { %1071 = vmatmul.mubr.bf16.vlgmr.msra.gmra.mrb[4].mxu1 %v1171_v2  ;;  %1076 = vmatprep.subr.bf16.mxu0 %v1208_v42  ;;  %v1180_v11 = vld [vmem:[%s1519_s5] sm:$0xff]   ;;  %v1181_v12 = vld [vmem:[%s1519_s5 + $0x8] sm:$0xff]   ;;  %v1182_v39 = vld [vmem:[%s1519_s5 + $0x10] sm:$0xff]  }
  0x45   :  { %1102 = vmatprep.mubr.msk.bf16.mxu1 %vm1209_vm0, %v1208_v42  ;;  %1095 = vmatpush3.bf16.msra.mxu1 %v1180_v11  ;;  %v886_v14 = vld [vmem:[%s1516_s2] ss:$0 sm:$0xff]  ;;  %v1183_v40 = vld [vmem:[%s1519_s5 + $0x18] sm:$0xff]   ;;  %s1210_s5 = smov [#allocation2]  }
  0x46   :  { %1096 = vmatprep.subr.bf16.mxu1 %v1208_v42  ;;  %v950_v41 = vld [vmem:[%s1518_s4] ss:$0 sm:$0xff]  ;;  %s878_s30 = sshll.u32 %s1210_s5, 4  ;;  %s879_s30 = int_to_ptr.vmem [resolvable:$true] %s878_s30 }
  0x47   :  { %1077 = vmatpush3.bf16.msra.mxu0 %v1173_v4  ;;  %s1184_s4 = scalar_lea.vmem %s879_s30, 128  ;;  %p1189_p1 = scmp.lt.s32.totalorder %s879_s30, %s879_s30 }
  0x48   :  { %1078 = vmatprep.subr.bf16.mxu0 %v1208_v42  ;;  %p1185_p0 = scmp.ne.s32.totalorder %s879_s30, %s1184_s4  ;;  %p1190_p2 = scmp.lt.s32.totalorder %s1184_s4, %s1184_s4 }
  0x49   :  { %1097 = vmatpush3.bf16.msra.mxu1 %v1181_v12 }
  0x4a   :  { %1098 = vmatprep.subr.bf16.mxu1 %v1208_v42  ;;  %p1191_p3 = por %p1190_p2, %p1189_p1 }
  0x4b   :  { %1079 = vmatpush3.bf16.msra.mxu0 %v1174_v5 }
  0x4c   :  { %1080 = vmatprep.subr.bf16.mxu0 %v1208_v42  ;;  %p1192_p4 = pnand %p1191_p3, %p1185_p0 }
  0x4d   :  { %1099 = vmatpush3.bf16.msra.mxu1 %v1182_v39 }
  0x4e   :  { %1100 = vmatprep.subr.bf16.mxu1 %v1208_v42 }
  0x4f   :  { %1081 = vmatpush3.bf16.msra.mxu0 %v1175_v6 }
  0x50   :  { %1082 = vmatprep.subr.bf16.mxu0 %v1208_v42 }
  0x51   :  { %1101 = vmatpush3.bf16.msra.mxu1 %v1183_v40 }
  0x53   :  { %1083 = vmatpush3.bf16.msra.mxu0 %v1176_v7 }
  0x54   :  { %1084 = vmatprep.subr.bf16.mxu0 %v1208_v42 }
  0x57   :  { %1085 = vmatpush3.bf16.msra.mxu0 %v1177_v8 }
  0x58   :  { %1086 = vmatprep.subr.bf16.mxu0 %v1208_v42 }
  0x5b   :  { %1087 = vmatpush3.bf16.msra.mxu0 %v1178_v9 }
  0x5c   :  { %1088 = vmatprep.subr.bf16.mxu0 %v1208_v42  ;;  %v959_v42 = vld [vmem:[%s1520_s6] ss:$0 sm:$0xff] }
  0x5f   :  { %1089 = vmatpush3.bf16.msra.mxu0 %v1179_v10 }
  0xf5   :  { %v981_v13 = vpop.f32.mrb[0].mxu0 }
  0xf6   :  { %v982_v15 = vpop.f32.mrb[1].mxu0 }
  0xf7   :  { %v983_v16 = vadd.f32 %v982_v15, %v981_v13  ;;  %v984_v17 = vpop.f32.mrb[2].mxu0  ;;  %v1003_v18 = vpop.f32.mrb[0].mxu1 }
  0xf8   :  { %v985_v19 = vpop.f32.mrb[3].mxu0  ;;  %v1004_v20 = vpop.f32.mrb[1].mxu1 }
  0xf9   :  { %v547_v21 = vadd.f32 %v983_v16, %v886_v14  ;;  %v1005_v22 = vadd.f32 %v1004_v20, %v1003_v18  ;;  %v1006_v23 = vpop.f32.mrb[2].mxu1 }
  0xfa   :  { %v1007_v24 = vpop.f32.mrb[3].mxu1 }
  0xfb   :  { %v587_v25 = vadd.f32 %v1005_v22, %v547_v21 }
 0x115   :  { %v1025_v26 = vpop.f32.mrb[4].mxu0 }
 0x116   :  { %v1026_v27 = vpop.f32.mrb[5].mxu0 }
 0x117   :  { %v1027_v28 = vadd.f32 %v1026_v27, %v1025_v26  ;;  %v1028_v29 = vpop.f32.mrb[6].mxu0  ;;  %v666_v30 = vpop.f32.mrb[4].mxu1 }
 0x118   :  { %v1029_v31 = vpop.f32.mrb[7].mxu0  ;;  %v1072_v32 = vpop.f32.mrb[5].mxu1 }
 0x119   :  { %v627_v33 = vadd.f32 %v1027_v28, %v587_v25  ;;  %v669_v34 = vpop.f32.mrb[6].mxu1 }
 0x11a   :  { %v1073_v35 = vpop.f32.mrb[7].mxu1 }
 0x11b   :  { %v667_v36 = vadd.f32 %v666_v30, %v627_v33 }
 0x11d   :  { %v672_v37 = vmax.f32 %v667_v36, 0.0 }
 0x11f   :  { %v673_v38 = vpack.c.bf16 %v672_v37, %v672_v37 }
 0x121   :  { %1091 = vmatmul.mubr.bf16.vlgmr.msra.gmra.mrb[8].mxu0 %v673_v38 }
 0x1f4   :  { %v779_v43 = vpop.f32.mrb[8].mxu0 }
 0x1f5   :  { %v780_v44 = vadd.f32 %v950_v41, %v779_v43  ;;  %v1092_v45 = vpop.f32.mrb[9].mxu0 }
 0x1f6   :  { %v782_v46 = vpop.f32.mrb[10].mxu0 }
 0x1f7   :  { %v785_v47 = vmax.f32 %v780_v44, 0.0  ;;  %v1093_v48 = vpop.f32.mrb[11].mxu0 }
 0x1f9   :  { %v786_v49 = vpack.c.bf16 %v785_v47, %v785_v47 }
 0x1fb   :  { %1103 = vmatmul.mubr.msk.bf16.vlgmr.msra.gmra.mrb[8].mxu1 %vm826_vm1, %v786_v49 }
 0x2ce   :  { %v864_v50 = vpop.f32.mrb[8].mxu1 }
 0x2cf   :  { %v865_v51 = vadd.f32 %v959_v42, %v864_v50  ;;  %v1104_v52 = vpop.f32.mrb[9].mxu1 }
 0x2d0   :  { %v867_v53 = vpop.f32.mrb[10].mxu1 }
 0x2d1   :  { %v870_v54 = vmax.f32 %v865_v51, 0.0  ;;  %v1105_v55 = vpop.f32.mrb[11].mxu1 }
 0x2d3   :  { %871 = vst [vmem:[#allocation2] sm:$0xff] %v870_v54 }
 0x2d4   :  { %1195 = shalt.err (!%p1192_p4)
}
 0x2d5   :  { %s1196_s6 = scalar_lea.hbm %s1521_s7, 128 }
 0x2d6   :  { %p1197_p5 = scmp.ne.s32.totalorder %s1521_s7, %s1196_s6  ;;  %p1200_p6 = scmp.lt.u32.totalorder %s1196_s6, %s1521_s7 }
 0x2d8   :  { %p1202_p7 = pnand %p1200_p6, %p1197_p5 }
 0x2da   :  { %1205 = shalt.err (!%p1202_p7)
}
 0x2db   :  { %881 = dma.vmem_to_hbm [thread:$0]  %s879_s30, 128, %s1521_s7, [#allocation3]  }
 0x2dc   :  { %1206 = dma.done.wait [#allocation3], 128  }
 0x2dd   :  { %1207 = vsyncadd [#allocation3], 4294967168 }
 0x2de   :  { %885 = vsyncpa [#allocation3], 1 }

</bundles_post_ra>
